<compile_context>
chip_gen: v6e
topology: v6e:2x2x1
jax: 0.10.0
libtpu: 0.0.40
codegen_flags: <defaults>
</compile_context>

<pallas_src>
import functools

import jax
import jax.numpy as jnp
from jax import lax
from jax.experimental import pallas as pl
from jax.experimental.pallas import tpu as pltpu


def _pick_row_fold(H, W, C, K, P, D, target_lanes=128, max_lanes=512):
    """Fold R image rows into the lane axis: layout (H/R, R*W*C).

    R must divide H and every vertical tap offset (u*D - P), so vertical taps
    stay whole folded rows (pure sublane rotates).  Pick the smallest R that
    reaches >= 128 lanes (full vreg width, lane-dense unmasked stores), capped
    so one image tile stays a handful of vregs.  If no R reaches 128 lanes the
    layout is merely lane-sparse, never incorrect.
    """
    WC = W * C
    offs = [u * D - P for u in range(K)]
    best = 1
    for R in range(1, H + 1):
        if R * WC > max_lanes:
            break
        if H % R:
            continue
        if any(o % R for o in offs):
            continue
        best = R
        if R * WC >= target_lanes:
            break
    return best


def _pick_batch_block(N, img_bytes, target_bytes=1 << 20, min_steps=2):
    """Images per grid step.

    Grow the per-step block toward ~1 MiB (amortises the ~0.35 us per-step
    overhead and the tiny-DMA penalty) while (a) keeping at least two grid
    steps so the two v7x TensorCores both get work on the "parallel" batch
    axis and (b) keeping the resident footprint (2x in + 2x out + weights)
    well under every generation's scoped VMEM default.
    """
    best = 1
    for b in range(1, N + 1):
        if N % b:
            continue
        if N // b < min_steps and N >= min_steps:
            break
        best = b
        if b * img_bytes >= target_bytes:
            break
    return best


def _add_act_conv_kernel(x_ref, w_ref, o_ref, *, H, W, C, K, P, D, R, Bblk):
    """One block of Bblk images per grid step, folded lane-dense layout.

    x_ref : (Bblk, H/R, R*W*C)   input images (lane axis = R rows * W * C)
    w_ref : (2, K*K, R*W*C)      both depthwise weights, pre-tiled to the
                                 folded layout, horizontal edge / fold-boundary
                                 masks already baked in
    o_ref : (Bblk, H/R, R*W*C)   output images
    """
    HR, LW = H // R, R * W * C
    offs = [u * D - P for u in range(K)]        # spatial tap offsets
    row_sh = [o // R for o in offs]             # folded-row (sublane) shifts
    lane_sh = [o * C for o in offs]             # lane shifts

    # Weights: one VMEM read per grid step, shared by every image in the block.
    w1, w2 = w_ref[0], w_ref[1]                 # (K*K, LW) each
    w1_rows = [w1[t] for t in range(K * K)]     # (LW,) per tap
    w2_rows = [w2[t] for t in range(K * K)]

    # f32 row masks for vertical taps that leave the image; built once per grid
    # step (the horizontal masks live inside the weights).
    r_idx = lax.broadcasted_iota(jnp.int32, (HR, LW), 0)
    row_mask = {}
    for rv in row_sh:
        if rv > 0:
            row_mask[rv] = (r_idx < HR - rv).astype(jnp.float32)
        elif rv < 0:
            row_mask[rv] = (r_idx >= -rv).astype(jnp.float32)

    def dwconv(act, w_rows):
        # acc[r, l] = sum_{u,v} act[r + dv/R, l + dh*C] * w[u*K+v][l]
        # Every shift is an in-register XLU rotate; wrapped-around entries are
        # always multiplied by a zero (masked weight lane or row mask).
        acc = None
        for u in range(K):
            rsh = (-row_sh[u]) % HR
            act_u = pltpu.roll(act, rsh, 0) if rsh else act
            if row_sh[u]:
                act_u = act_u * row_mask[row_sh[u]]
            for v in range(K):
                lsh = (-lane_sh[v]) % LW
                tap = pltpu.roll(act_u, lsh, 1) if lsh else act_u
                term = tap * w_rows[u * K + v]
                acc = term if acc is None else acc + term
        return acc

    def per_image(b, carry):
        x = x_ref[b].astype(jnp.float32)              # (HR, LW), a few vregs
        a = jnp.maximum(x, 0.0)                       # ReLU
        h = jnp.maximum(dwconv(a, w1_rows), 0.0)      # depthwise conv1 + ReLU
        y = dwconv(h, w2_rows)                        # depthwise conv2
        o_ref[b] = (x + y).astype(o_ref.dtype)        # residual, lane-dense store
        return carry

    if Bblk == 1:
        per_image(0, None)
    else:
        lax.fori_loop(0, Bblk, per_image, None,
                      unroll=True if Bblk <= 8 else 8)


def add_act_conv(x_nchw, w1_oihw, w2_oihw, *, padding, dilation):
    """x: (N, C, H, W); weights: (C, 1, K, K) depthwise, bias=False."""
    N, C, H, W = x_nchw.shape
    K = w1_oihw.shape[-1]
    P, D = int(padding), int(dilation)
    # Residual add requires the convs to preserve the spatial size.
    assert 2 * P == D * (K - 1), "padding/dilation must preserve spatial size"

    R = _pick_row_fold(H, W, C, K, P, D)
    HR, LW, WC = H // R, R * W * C, W * C

    # NCHW -> NHWC -> fold R image rows + W + C into the lane axis.
    x_folded = jnp.transpose(x_nchw, (0, 2, 3, 1)).reshape(N, HR, LW)

    # Horizontal validity of every tap, baked into the weights: lane l holds
    # column w = (l % (W*C)) // C; tap (u, v) reads column w + v*D - P, which
    # must land in [0, W).  (Fold-boundary crossings are the same condition.)
    col = (jnp.arange(LW, dtype=jnp.int32) % WC) // C
    lane_valid = jnp.stack(
        [((col + (v * D - P) >= 0) & (col + (v * D - P) < W))
         for _u in range(K) for v in range(K)]).astype(jnp.float32)  # (K*K, LW)

    def _tile_w(w_oihw):
        # (C,1,K,K) -> per-tap channel vectors (K*K, C) with tap index u*K + v,
        # tiled to the folded lane layout (lane j holds channel j % C), then
        # masked so out-of-image horizontal taps contribute exactly zero.
        w_kkc = jnp.transpose(w_oihw[:, 0], (1, 2, 0)).reshape(K * K, C)
        return jnp.tile(w_kkc.astype(jnp.float32), (1, R * W)) * lane_valid

    # Both depthwise weights merged into ONE constant-index input (fetched once).
    w_all = jnp.stack([_tile_w(w1_oihw), _tile_w(w2_oihw)])   # (2, K*K, LW)

    img_bytes = HR * LW * x_nchw.dtype.itemsize
    Bblk = _pick_batch_block(N, img_bytes)
    steps = N // Bblk

    kernel = functools.partial(_add_act_conv_kernel,
                               H=H, W=W, C=C, K=K, P=P, D=D, R=R, Bblk=Bblk)
    out_folded = pl.pallas_call(
        kernel,
        out_shape=jax.ShapeDtypeStruct((N, HR, LW), x_nchw.dtype),
        grid=(steps,),
        in_specs=[
            pl.BlockSpec((Bblk, HR, LW), lambda n: (n, 0, 0)),
            pl.BlockSpec((2, K * K, LW), lambda n: (0, 0, 0)),
        ],
        out_specs=pl.BlockSpec((Bblk, HR, LW), lambda n: (n, 0, 0)),
        compiler_params=pltpu.CompilerParams(
            dimension_semantics=("parallel",)),   # v7x: steps split across TCs
    )(x_folded, w_all)

    # Back to NCHW.
    return jnp.transpose(out_folded.reshape(N, H, W, C), (0, 3, 1, 2))


def _jax_reference(x_nchw, w1_oihw, w2_oihw, *, padding, dilation):
    """Pure-JAX reference matching the PyTorch module semantics (NCHW)."""
    C = x_nchw.shape[1]

    def dw(a, w):
        return lax.conv_general_dilated(
            a, w, window_strides=(1, 1),
            padding=[(padding, padding), (padding, padding)],
            rhs_dilation=(dilation, dilation),
            dimension_numbers=('NCHW', 'OIHW', 'NCHW'),
            feature_group_count=C)

    a = jnp.maximum(x_nchw, 0.0)
    b = jnp.maximum(dw(a, w1_oihw), 0.0)
    return x_nchw + dw(b, w2_oihw)


if __name__ == "__main__":
    # AddActConv(n_ch=4, kernel_size=3, padding=2, dilation=2); bias=False per spec.
    n_ch, K, P, D = 4, 3, 2, 2
    N, H, W = 2, 16, 16

    key = jax.random.PRNGKey(0)
    kx, k1, k2 = jax.random.split(key, 3)

    x_nchw = jax.random.normal(kx, (N, n_ch, H, W), jnp.float32)
    bound = 1.0 / float(K * K) ** 0.5
    w1_oihw = jax.random.uniform(k1, (n_ch, 1, K, K), jnp.float32, -bound, bound)
    w2_oihw = jax.random.uniform(k2, (n_ch, 1, K, K), jnp.float32, -bound, bound)

    out = jax.block_until_ready(
        add_act_conv(x_nchw, w1_oihw, w2_oihw, padding=P, dilation=D))

    ref = _jax_reference(x_nchw, w1_oihw, w2_oihw, padding=P, dilation=D)
    max_err = float(jnp.max(jnp.abs(out - ref)))
    assert jnp.allclose(out, ref, atol=1e-5, rtol=1e-5), max_err

    print("KERNEL_OK")
</pallas_src>

<mosaic_0001>
module attributes {stable_mosaic.version = 11 : i64} {
  func.func @_add_act_conv_kernel(%arg0: i32, %arg1: memref<1x8x128xf32, #tpu.memory_space<vmem>>, %arg2: memref<2x9x128xf32, #tpu.memory_space<vmem>>, %arg3: memref<1x8x128xf32, #tpu.memory_space<vmem>>) attributes {dimension_semantics = [#tpu.dimension_semantics<parallel>], iteration_bounds = array<i64: 2>, scalar_prefetch = 0 : i64, scratch_operands = 0 : i64, tpu.core_type = #tpu.core_type<tc>, window_params = [{transform_indices = @transform_0, window_bounds = array<i64: 1, 8, 128>}, {pipeline_mode = #tpu.pipeline_mode<synchronous>, transform_indices = @transform_1, window_bounds = array<i64: 2, 9, 128>}, {transform_indices = @transform_2, window_bounds = array<i64: 1, 8, 128>}]} {
    %c0 = arith.constant 0 : index
    %c0_0 = arith.constant 0 : index
    %c0_1 = arith.constant 0 : index
    %0 = vector.load %arg2[%c0, %c0_0, %c0_1] : memref<2x9x128xf32, #tpu.memory_space<vmem>>, vector<1x9x128xf32>
    %1 = vector.shape_cast %0 : vector<1x9x128xf32> to vector<9x128xf32>
    %c1 = arith.constant 1 : index
    %c0_2 = arith.constant 0 : index
    %c0_3 = arith.constant 0 : index
    %2 = vector.load %arg2[%c1, %c0_2, %c0_3] : memref<2x9x128xf32, #tpu.memory_space<vmem>>, vector<1x9x128xf32>
    %3 = vector.shape_cast %2 : vector<1x9x128xf32> to vector<9x128xf32>
    %4 = vector.extract_strided_slice %1 {offsets = [0, 0], sizes = [1, 128], strides = [1, 1]} : vector<9x128xf32> to vector<1x128xf32>
    %5 = vector.shape_cast %4 : vector<1x128xf32> to vector<128xf32>
    %6 = vector.extract_strided_slice %1 {offsets = [1, 0], sizes = [1, 128], strides = [1, 1]} : vector<9x128xf32> to vector<1x128xf32>
    %7 = vector.shape_cast %6 : vector<1x128xf32> to vector<128xf32>
    %8 = vector.extract_strided_slice %1 {offsets = [2, 0], sizes = [1, 128], strides = [1, 1]} : vector<9x128xf32> to vector<1x128xf32>
    %9 = vector.shape_cast %8 : vector<1x128xf32> to vector<128xf32>
    %10 = vector.extract_strided_slice %1 {offsets = [3, 0], sizes = [1, 128], strides = [1, 1]} : vector<9x128xf32> to vector<1x128xf32>
    %11 = vector.shape_cast %10 : vector<1x128xf32> to vector<128xf32>
    %12 = vector.extract_strided_slice %1 {offsets = [4, 0], sizes = [1, 128], strides = [1, 1]} : vector<9x128xf32> to vector<1x128xf32>
    %13 = vector.shape_cast %12 : vector<1x128xf32> to vector<128xf32>
    %14 = vector.extract_strided_slice %1 {offsets = [5, 0], sizes = [1, 128], strides = [1, 1]} : vector<9x128xf32> to vector<1x128xf32>
    %15 = vector.shape_cast %14 : vector<1x128xf32> to vector<128xf32>
    %16 = vector.extract_strided_slice %1 {offsets = [6, 0], sizes = [1, 128], strides = [1, 1]} : vector<9x128xf32> to vector<1x128xf32>
    %17 = vector.shape_cast %16 : vector<1x128xf32> to vector<128xf32>
    %18 = vector.extract_strided_slice %1 {offsets = [7, 0], sizes = [1, 128], strides = [1, 1]} : vector<9x128xf32> to vector<1x128xf32>
    %19 = vector.shape_cast %18 : vector<1x128xf32> to vector<128xf32>
    %20 = vector.extract_strided_slice %1 {offsets = [8, 0], sizes = [1, 128], strides = [1, 1]} : vector<9x128xf32> to vector<1x128xf32>
    %21 = vector.shape_cast %20 : vector<1x128xf32> to vector<128xf32>
    %22 = vector.extract_strided_slice %3 {offsets = [0, 0], sizes = [1, 128], strides = [1, 1]} : vector<9x128xf32> to vector<1x128xf32>
    %23 = vector.shape_cast %22 : vector<1x128xf32> to vector<128xf32>
    %24 = vector.extract_strided_slice %3 {offsets = [1, 0], sizes = [1, 128], strides = [1, 1]} : vector<9x128xf32> to vector<1x128xf32>
    %25 = vector.shape_cast %24 : vector<1x128xf32> to vector<128xf32>
    %26 = vector.extract_strided_slice %3 {offsets = [2, 0], sizes = [1, 128], strides = [1, 1]} : vector<9x128xf32> to vector<1x128xf32>
    %27 = vector.shape_cast %26 : vector<1x128xf32> to vector<128xf32>
    %28 = vector.extract_strided_slice %3 {offsets = [3, 0], sizes = [1, 128], strides = [1, 1]} : vector<9x128xf32> to vector<1x128xf32>
    %29 = vector.shape_cast %28 : vector<1x128xf32> to vector<128xf32>
    %30 = vector.extract_strided_slice %3 {offsets = [4, 0], sizes = [1, 128], strides = [1, 1]} : vector<9x128xf32> to vector<1x128xf32>
    %31 = vector.shape_cast %30 : vector<1x128xf32> to vector<128xf32>
    %32 = vector.extract_strided_slice %3 {offsets = [5, 0], sizes = [1, 128], strides = [1, 1]} : vector<9x128xf32> to vector<1x128xf32>
    %33 = vector.shape_cast %32 : vector<1x128xf32> to vector<128xf32>
    %34 = vector.extract_strided_slice %3 {offsets = [6, 0], sizes = [1, 128], strides = [1, 1]} : vector<9x128xf32> to vector<1x128xf32>
    %35 = vector.shape_cast %34 : vector<1x128xf32> to vector<128xf32>
    %36 = vector.extract_strided_slice %3 {offsets = [7, 0], sizes = [1, 128], strides = [1, 1]} : vector<9x128xf32> to vector<1x128xf32>
    %37 = vector.shape_cast %36 : vector<1x128xf32> to vector<128xf32>
    %38 = vector.extract_strided_slice %3 {offsets = [8, 0], sizes = [1, 128], strides = [1, 1]} : vector<9x128xf32> to vector<1x128xf32>
    %39 = vector.shape_cast %38 : vector<1x128xf32> to vector<128xf32>
    %40 = tpu.iota {dimensions = array<i32: 0>} : vector<8x128xi32>
    %c1_i32 = arith.constant 1 : i32
    %41 = vector.broadcast %c1_i32 : i32 to vector<8x128xi32>
    %42 = arith.cmpi sge, %40, %41 : vector<8x128xi32>
    %43 = arith.extui %42 : vector<8x128xi1> to vector<8x128xi32>
    %44 = arith.sitofp %43 : vector<8x128xi32> to vector<8x128xf32>
    %c7_i32 = arith.constant 7 : i32
    %45 = vector.broadcast %c7_i32 : i32 to vector<8x128xi32>
    %46 = arith.cmpi slt, %40, %45 : vector<8x128xi32>
    %47 = arith.extui %46 : vector<8x128xi1> to vector<8x128xi32>
    %48 = arith.sitofp %47 : vector<8x128xi32> to vector<8x128xf32>
    %c0_4 = arith.constant 0 : index
    %c0_5 = arith.constant 0 : index
    %c0_6 = arith.constant 0 : index
    %49 = vector.load %arg1[%c0_4, %c0_5, %c0_6] : memref<1x8x128xf32, #tpu.memory_space<vmem>>, vector<1x8x128xf32>
    %50 = vector.shape_cast %49 : vector<1x8x128xf32> to vector<8x128xf32>
    %cst = arith.constant 0.000000e+00 : f32
    %51 = vector.broadcast %cst : f32 to vector<8x128xf32>
    %52 = arith.maximumf %50, %51 : vector<8x128xf32>
    %c1_i32_7 = arith.constant 1 : i32
    %53 = tpu.dynamic_rotate %52 by %c1_i32_7 dim 0 : vector<8x128xf32>, i32 -> vector<8x128xf32>
    %54 = arith.mulf %53, %44 : vector<8x128xf32>
    %c8_i32 = arith.constant 8 : i32
    %55 = tpu.dynamic_rotate %54 by %c8_i32 dim 1 : vector<8x128xf32>, i32 -> vector<8x128xf32>
    %56 = vector.shape_cast %5 : vector<128xf32> to vector<1x128xf32>
    %57 = vector.broadcast %56 : vector<1x128xf32> to vector<8x128xf32>
    %58 = arith.mulf %55, %57 : vector<8x128xf32>
    %59 = vector.shape_cast %7 : vector<128xf32> to vector<1x128xf32>
    %60 = vector.broadcast %59 : vector<1x128xf32> to vector<8x128xf32>
    %61 = arith.mulf %54, %60 : vector<8x128xf32>
    %62 = arith.addf %58, %61 : vector<8x128xf32>
    %c120_i32 = arith.constant 120 : i32
    %63 = tpu.dynamic_rotate %54 by %c120_i32 dim 1 : vector<8x128xf32>, i32 -> vector<8x128xf32>
    %64 = vector.shape_cast %9 : vector<128xf32> to vector<1x128xf32>
    %65 = vector.broadcast %64 : vector<1x128xf32> to vector<8x128xf32>
    %66 = arith.mulf %63, %65 : vector<8x128xf32>
    %67 = arith.addf %62, %66 : vector<8x128xf32>
    %c8_i32_8 = arith.constant 8 : i32
    %68 = tpu.dynamic_rotate %52 by %c8_i32_8 dim 1 : vector<8x128xf32>, i32 -> vector<8x128xf32>
    %69 = vector.shape_cast %11 : vector<128xf32> to vector<1x128xf32>
    %70 = vector.broadcast %69 : vector<1x128xf32> to vector<8x128xf32>
    %71 = arith.mulf %68, %70 : vector<8x128xf32>
    %72 = arith.addf %67, %71 : vector<8x128xf32>
    %73 = vector.shape_cast %13 : vector<128xf32> to vector<1x128xf32>
    %74 = vector.broadcast %73 : vector<1x128xf32> to vector<8x128xf32>
    %75 = arith.mulf %52, %74 : vector<8x128xf32>
    %76 = arith.addf %72, %75 : vector<8x128xf32>
    %c120_i32_9 = arith.constant 120 : i32
    %77 = tpu.dynamic_rotate %52 by %c120_i32_9 dim 1 : vector<8x128xf32>, i32 -> vector<8x128xf32>
    %78 = vector.shape_cast %15 : vector<128xf32> to vector<1x128xf32>
    %79 = vector.broadcast %78 : vector<1x128xf32> to vector<8x128xf32>
    %80 = arith.mulf %77, %79 : vector<8x128xf32>
    %81 = arith.addf %76, %80 : vector<8x128xf32>
    %c7_i32_10 = arith.constant 7 : i32
    %82 = tpu.dynamic_rotate %52 by %c7_i32_10 dim 0 : vector<8x128xf32>, i32 -> vector<8x128xf32>
    %83 = arith.mulf %82, %48 : vector<8x128xf32>
    %c8_i32_11 = arith.constant 8 : i32
    %84 = tpu.dynamic_rotate %83 by %c8_i32_11 dim 1 : vector<8x128xf32>, i32 -> vector<8x128xf32>
    %85 = vector.shape_cast %17 : vector<128xf32> to vector<1x128xf32>
    %86 = vector.broadcast %85 : vector<1x128xf32> to vector<8x128xf32>
    %87 = arith.mulf %84, %86 : vector<8x128xf32>
    %88 = arith.addf %81, %87 : vector<8x128xf32>
    %89 = vector.shape_cast %19 : vector<128xf32> to vector<1x128xf32>
    %90 = vector.broadcast %89 : vector<1x128xf32> to vector<8x128xf32>
    %91 = arith.mulf %83, %90 : vector<8x128xf32>
    %92 = arith.addf %88, %91 : vector<8x128xf32>
    %c120_i32_12 = arith.constant 120 : i32
    %93 = tpu.dynamic_rotate %83 by %c120_i32_12 dim 1 : vector<8x128xf32>, i32 -> vector<8x128xf32>
    %94 = vector.shape_cast %21 : vector<128xf32> to vector<1x128xf32>
    %95 = vector.broadcast %94 : vector<1x128xf32> to vector<8x128xf32>
    %96 = arith.mulf %93, %95 : vector<8x128xf32>
    %97 = arith.addf %92, %96 : vector<8x128xf32>
    %cst_13 = arith.constant 0.000000e+00 : f32
    %98 = vector.broadcast %cst_13 : f32 to vector<8x128xf32>
    %99 = arith.maximumf %97, %98 : vector<8x128xf32>
    %c1_i32_14 = arith.constant 1 : i32
    %100 = tpu.dynamic_rotate %99 by %c1_i32_14 dim 0 : vector<8x128xf32>, i32 -> vector<8x128xf32>
    %101 = arith.mulf %100, %44 : vector<8x128xf32>
    %c8_i32_15 = arith.constant 8 : i32
    %102 = tpu.dynamic_rotate %101 by %c8_i32_15 dim 1 : vector<8x128xf32>, i32 -> vector<8x128xf32>
    %103 = vector.shape_cast %23 : vector<128xf32> to vector<1x128xf32>
    %104 = vector.broadcast %103 : vector<1x128xf32> to vector<8x128xf32>
    %105 = arith.mulf %102, %104 : vector<8x128xf32>
    %106 = vector.shape_cast %25 : vector<128xf32> to vector<1x128xf32>
    %107 = vector.broadcast %106 : vector<1x128xf32> to vector<8x128xf32>
    %108 = arith.mulf %101, %107 : vector<8x128xf32>
    %109 = arith.addf %105, %108 : vector<8x128xf32>
    %c120_i32_16 = arith.constant 120 : i32
    %110 = tpu.dynamic_rotate %101 by %c120_i32_16 dim 1 : vector<8x128xf32>, i32 -> vector<8x128xf32>
    %111 = vector.shape_cast %27 : vector<128xf32> to vector<1x128xf32>
    %112 = vector.broadcast %111 : vector<1x128xf32> to vector<8x128xf32>
    %113 = arith.mulf %110, %112 : vector<8x128xf32>
    %114 = arith.addf %109, %113 : vector<8x128xf32>
    %c8_i32_17 = arith.constant 8 : i32
    %115 = tpu.dynamic_rotate %99 by %c8_i32_17 dim 1 : vector<8x128xf32>, i32 -> vector<8x128xf32>
    %116 = vector.shape_cast %29 : vector<128xf32> to vector<1x128xf32>
    %117 = vector.broadcast %116 : vector<1x128xf32> to vector<8x128xf32>
    %118 = arith.mulf %115, %117 : vector<8x128xf32>
    %119 = arith.addf %114, %118 : vector<8x128xf32>
    %120 = vector.shape_cast %31 : vector<128xf32> to vector<1x128xf32>
    %121 = vector.broadcast %120 : vector<1x128xf32> to vector<8x128xf32>
    %122 = arith.mulf %99, %121 : vector<8x128xf32>
    %123 = arith.addf %119, %122 : vector<8x128xf32>
    %c120_i32_18 = arith.constant 120 : i32
    %124 = tpu.dynamic_rotate %99 by %c120_i32_18 dim 1 : vector<8x128xf32>, i32 -> vector<8x128xf32>
    %125 = vector.shape_cast %33 : vector<128xf32> to vector<1x128xf32>
    %126 = vector.broadcast %125 : vector<1x128xf32> to vector<8x128xf32>
    %127 = arith.mulf %124, %126 : vector<8x128xf32>
    %128 = arith.addf %123, %127 : vector<8x128xf32>
    %c7_i32_19 = arith.constant 7 : i32
    %129 = tpu.dynamic_rotate %99 by %c7_i32_19 dim 0 : vector<8x128xf32>, i32 -> vector<8x128xf32>
    %130 = arith.mulf %129, %48 : vector<8x128xf32>
    %c8_i32_20 = arith.constant 8 : i32
    %131 = tpu.dynamic_rotate %130 by %c8_i32_20 dim 1 : vector<8x128xf32>, i32 -> vector<8x128xf32>
    %132 = vector.shape_cast %35 : vector<128xf32> to vector<1x128xf32>
    %133 = vector.broadcast %132 : vector<1x128xf32> to vector<8x128xf32>
    %134 = arith.mulf %131, %133 : vector<8x128xf32>
    %135 = arith.addf %128, %134 : vector<8x128xf32>
    %136 = vector.shape_cast %37 : vector<128xf32> to vector<1x128xf32>
    %137 = vector.broadcast %136 : vector<1x128xf32> to vector<8x128xf32>
    %138 = arith.mulf %130, %137 : vector<8x128xf32>
    %139 = arith.addf %135, %138 : vector<8x128xf32>
    %c120_i32_21 = arith.constant 120 : i32
    %140 = tpu.dynamic_rotate %130 by %c120_i32_21 dim 1 : vector<8x128xf32>, i32 -> vector<8x128xf32>
    %141 = vector.shape_cast %39 : vector<128xf32> to vector<1x128xf32>
    %142 = vector.broadcast %141 : vector<1x128xf32> to vector<8x128xf32>
    %143 = arith.mulf %140, %142 : vector<8x128xf32>
    %144 = arith.addf %139, %143 : vector<8x128xf32>
    %145 = arith.addf %50, %144 : vector<8x128xf32>
    %c0_22 = arith.constant 0 : index
    %c0_23 = arith.constant 0 : index
    %c0_24 = arith.constant 0 : index
    %146 = vector.load %arg3[%c0_22, %c0_23, %c0_24] : memref<1x8x128xf32, #tpu.memory_space<vmem>>, vector<1x8x128xf32>
    %147 = vector.shape_cast %146 : vector<1x8x128xf32> to vector<8x128xf32>
    %148 = vector.shape_cast %145 : vector<8x128xf32> to vector<1x8x128xf32>
    tpu.vector_store %arg3[%c0_22, %c0_23, %c0_24], %148 {strides = array<i32>} : memref<1x8x128xf32, #tpu.memory_space<vmem>>, vector<1x8x128xf32>,
    return
  }
  func.func @transform_0(%arg0: i32) -> (i32, i32, i32) {
    %c0_i32 = arith.constant 0 : i32
    %c0_i32_0 = arith.constant 0 : i32
    %c0_i32_1 = arith.constant 0 : i32
    return %arg0, %c0_i32, %c0_i32_0 : i32, i32, i32
  }
  func.func @transform_1(%arg0: i32) -> (i32, i32, i32) {
    %c0_i32 = arith.constant 0 : i32
    %c0_i32_0 = arith.constant 0 : i32
    %c0_i32_1 = arith.constant 0 : i32
    %c0_i32_2 = arith.constant 0 : i32
    return %c0_i32, %c0_i32_0, %c0_i32_1 : i32, i32, i32
  }
  func.func @transform_2(%arg0: i32) -> (i32, i32, i32) {
    %c0_i32 = arith.constant 0 : i32
    %c0_i32_0 = arith.constant 0 : i32
    %c0_i32_1 = arith.constant 0 : i32
    return %arg0, %c0_i32, %c0_i32_0 : i32, i32, i32
  }
}

</mosaic_0001>

<bundles_post_ra>
// kernel: tpu_custom_call.1
= control target key start
LH: loop header
LB: loop body
LE: loop exit
PB: predicated region body
PF: predicated region fallthrough
CT: control target
= control target key end

     0   :  { %7 = vsyncpa [#allocation3], 0  ;;  %s634_s0 = inlined_call_operand.vmem [shape: f32[2,8,128], index: 0, kind: input, shape index: {}]   ;;  %s635_s1 = inlined_call_operand.vmem [shape: f32[2,9,128], index: 1, kind: input, shape index: {}]   ;;  %s636_s2 = inlined_call_operand.hbm [shape: f32[2,8,128], index: 2, kind: output, shape index: {}]  }
   0x1   :  { %9 = vsyncpa [#allocation3 + $0x1], 0  ;;  %s507_s9 = smov 0   ;;  %s509_s10 = smov 0  }
   0x2   :  { %s511_s11 = smov 0   ;;  %s513_s12 = smov 0  }
   0x3 LB: > { %s528_s13 = sadd.s32 4294967295, %s486_s12   ;;  %s368_s14 = sadd.s32 4294967294, %s486_s12   ;;  %s486_s12 = sphi %s513_s12, %s642_s12   ;;  %s482_s11 = sphi %s511_s11, %s641_s11   ;;  %s478_s10 = sphi %s509_s10, %s640_s10   ;;  %s474_s9 = sphi %s507_s9, %s639_s9  }
   0x4   : > { %s532_s15 = sadd.s32 1, %s486_s12   ;;  %s69_s16 = sadd.s32 1, %s482_s11 }
   0x5   : > { %s66_s17 = ssub.s32 %s486_s12, %s532_s15  ;;  %p79_p0 = scmp.ne.s32.totalorder %s482_s11, %s478_s10 }
   0x6   : > { %p67_p1 = scmp.eq.s32.totalorder %s66_s17, 0  ;;  %p80_p2 = scmp.eq.s32.totalorder %s528_s13, 1 }
   0x7   : > { %p85_p3 = scmp.ne.s32.totalorder %s478_s10, %s474_s9  ;;  %p86_p4 = scmp.eq.s32.totalorder %s368_s14, 1 }
   0x8   : > { %s543_s18 = scalar_select %p67_p1, %s482_s11, %s69_s16  }
   0x9   : > { %p545_p5 = por %p80_p2, %p79_p0  ;;  %p549_p6 = por %p86_p4, %p85_p3 }
   0xa   : > { %p371_p7 = scmp.ge.s32.totalorder %s486_s12, 1  ;;  %p114_p8 = scmp.lt.s32.totalorder %s486_s12, 3 }
   0xc   : > { %p115_p9 = pnand %p371_p7, %p114_p8 }
   0xd   : > { %p135_p10 = scmp.lt.s32.totalorder (!%p115_p9), %s528_s13, 1  ;;  %s489_s28 = smov (!%p115_p9), 8  }
   0xe   : > { %118 = sbr.rel (%p115_p9) target bundleno = 319 (0x13f), region = 28  ;;  %s490_s29 = smov (!%p115_p9), 120  }
   0xf   : > { %s132_s6 = sand.u32 (!%p115_p9), 1, %s478_s10   ;;  %s381_s16 = sshll.u32 (!%p115_p9), %s528_s13, 7 }
  0x10   : > { %s372_s7 = sshll.u32 (!%p115_p9), %s132_s6, 3  ;;  %s307_s24 = scalar_lea.hbm (!%p115_p9), %s636_s2, %s381_s16 }
  0x11   : > { %s134_s17 = scalar_lea.vmem (!%p115_p9), [#allocation2], %s372_s7  ;;  %s491_s27 = smov (!%p115_p9), [#allocation2]  }
  0x13   : > { %v144_v0 = vlaneseq  ;;  %s136_s21 = scalar_select %p135_p10, %s528_s13, 1  ;;  %v139_v4 = vld [vmem:[%s635_s1] sm:$0xff]  ;;  %v488_v7 = vmov 0.0   ;;  %v378_v45 = vld [vmem:[%s635_s1 + $0x8] ss:$0 sm:$0xff]  ;;  %v374_v50 = vld [vmem:[%s635_s1 + $0x10] sm:$0xff] }
  0x15   : > { %v557_v1 = vshrl.u32 %v144_v0, 7  ;;  %s373_s22 = sshll.u32 %s136_s21, 3  ;;  %s309_s21 = sshll.u32 %s134_s17, 4  ;;  %s310_s21 = int_to_ptr.vmem [resolvable:$true] %s309_s21 }
  0x16   : > { %s138_s25 = scalar_lea.vmem %s634_s0, %s373_s22  ;;  %s426_s26 = scalar_lea.vmem %s310_s21, 128 }
  0x17   : > { %vm146_vm0 = vcmp.ge.s32.totalorder %v557_v1, 1  ;;  %v165_v2 = vsub.s32 1, %v557_v1  ;;  %v564_v3 = vld [vmem:[%s138_s25] sm:$0xff]  ;;  %vm149_vm1 = vcmp.lt.s32.totalorder %v557_v1, 7  ;;  %v187_v5 = vsub.s32 4, %v557_v1  ;;  %s296_s25 = scalar_lea.sflag [#allocation3], %s132_s6  ;;  %p427_p11 = scmp.ne.s32.totalorder %s310_s21, %s426_s26 }
  0x18   : > { %v153_v6 = vmax.f32 %v564_v3, 0.0  ;;  %v376_v8 = vsel %vm146_vm0, 1.0, %v488_v7  ;;  %v377_v11 = vsel %vm149_vm1, 1.0, %v488_v7  ;;  %v211_v15 = vsub.s32 7, %v557_v1 }
  0x19   : > { %v188_v9 = vrot.slane %v139_v4, %v187_v5  ;;  %v166_v13 = vrot.slane %v139_v4, %v165_v2  ;;  %v160_v21 = vsub.s32 0, %v557_v1  ;;  %v173_v23 = vsub.s32 2, %v557_v1  ;;  %p428_p12 = pnand %p427_p11, %p545_p5 }
  0x1a   : > { %v154_v10 = vrot.slane %v153_v6, 7  ;;  %177 = vrot.lane.b32.xlu1 %v153_v6, %s489_s28  ;;  %v199_v12 = vrot.slane %v153_v6, 1  ;;  %v212_v18 = vrot.slane %v139_v4, %v211_v15  ;;  %v181_v24 = vsub.s32 3, %v557_v1 }
  0x1b   : > { %v189_v14 = vmul.f32 %v188_v9, %v153_v6  ;;  %v161_v22 = vrot.slane %v139_v4, %v160_v21  ;;  %v174_v28 = vrot.slane %v139_v4, %v173_v23  ;;  %v195_v30 = vsub.s32 5, %v557_v1  ;;  %p429_p13 = pneg %p428_p12 }
  0x1c   : > { %v155_v16 = vmul.f32 %v376_v8, %v154_v10  ;;  %v200_v17 = vmul.f32 %v377_v11, %v199_v12  ;;  %v182_v29 = vrot.slane %v139_v4, %v181_v24  ;;  %v205_v31 = vsub.s32 6, %v557_v1 }
  0x1d   : > { %v196_v36 = vrot.slane %v139_v4, %v195_v30  ;;  %v258_v53 = vrot.slane %v374_v50, %v187_v5  ;;  %v236_v55 = vrot.slane %v374_v50, %v165_v2  ;;  %v282_v59 = vrot.slane %v374_v50, %v211_v15 }
  0x1e   : > { %156 = vrot.lane.b32.xlu0 %v155_v16, %s489_s28  ;;  %191 = vrot.lane.b32.xlu1 %v153_v6, %s490_s29  ;;  %v167_v19 = vmul.f32 %v166_v13, %v155_v16  ;;  %v213_v20 = vmul.f32 %v212_v18, %v200_v17  ;;  %v206_v39 = vrot.slane %v139_v4, %v205_v31 }
  0x1f   : > { %v231_v0 = vrot.slane %v374_v50, %v160_v21  ;;  %v244_v1 = vrot.slane %v374_v50, %v173_v23  ;;  %v252_v6 = vrot.slane %v374_v50, %v181_v24  ;;  %v266_v10 = vrot.slane %v374_v50, %v195_v30  ;;  %v379_v21 = vld [vmem:[%s635_s1 + $0x18] ss:$0 sm:$0xff] }
  0x20   : > { %v276_v15 = vrot.slane %v374_v50, %v205_v31 }
  0x22   : > { %169 = vrot.lane.b32.xlu0 %v155_v16, %s490_s29  ;;  %215 = vrot.lane.b32.xlu1 %v200_v17, %s490_s29 }
  0x26   : > { %201 = vrot.lane.b32.xlu0 %v200_v17, %s489_s28 }
  0x8c   : > { %v178_v26 = vpop.permute.xlu1 %177 }
  0x8d   : > { %v183_v35 = vmul.f32 %v182_v29, %v178_v26 }
  0x90   : > { %v157_v25 = vpop.permute.xlu0 %156  ;;  %v192_v37 = vpop.permute.xlu1 %191 }
  0x91   : > { %v162_v27 = vmul.f32 %v161_v22, %v157_v25  ;;  %v197_v42 = vmul.f32 %v196_v36, %v192_v37 }
  0x93   : > { %v168_v33 = vadd.f32 %v167_v19, %v162_v27 }
  0x94   : > { %v170_v32 = vpop.permute.xlu0 %169  ;;  %v216_v46 = vpop.permute.xlu1 %215 }
  0x95   : > { %v175_v34 = vmul.f32 %v174_v28, %v170_v32  ;;  %v221_v49 = vmul.f32 %v378_v45, %v216_v46 }
  0x97   : > { %v176_v38 = vadd.f32 %v175_v34, %v168_v33 }
  0x98   : > { %v202_v40 = vpop.permute.xlu0 %201 }
  0x99   : > { %v184_v41 = vadd.f32 %v183_v35, %v176_v38  ;;  %v207_v44 = vmul.f32 %v206_v39, %v202_v40 }
  0x9b   : > { %v190_v43 = vadd.f32 %v189_v14, %v184_v41 }
  0x9d   : > { %v198_v47 = vadd.f32 %v197_v42, %v190_v43 }
  0x9f   : > { %v208_v48 = vadd.f32 %v207_v44, %v198_v47 }
  0xa1   : > { %v214_v51 = vadd.f32 %v213_v20, %v208_v48 }
  0xa3   : > { %v222_v52 = vadd.f32 %v221_v49, %v214_v51 }
  0xa5   : > { %v223_v54 = vmax.f32 %v222_v52, 0.0 }
  0xa7   : > { %v224_v56 = vrot.slane %v223_v54, 7  ;;  %v269_v57 = vrot.slane %v223_v54, 1  ;;  %v259_v58 = vmul.f32 %v258_v53, %v223_v54 }
  0xa9   : > { %v225_v60 = vmul.f32 %v376_v8, %v224_v56  ;;  %v270_v61 = vmul.f32 %v377_v11, %v269_v57 }
  0xab   : > { %239 = vrot.lane.b32.xlu1 %v225_v60, %s490_s29  ;;  %226 = vrot.lane.b32.xlu0 %v225_v60, %s489_s28  ;;  %v237_v62 = vmul.f32 %v236_v55, %v225_v60  ;;  %v283_v63 = vmul.f32 %v282_v59, %v270_v61 }
  0xaf   : > { %261 = vrot.lane.b32.xlu1 %v223_v54, %s490_s29  ;;  %247 = vrot.lane.b32.xlu0 %v223_v54, %s489_s28 }
  0xb3   : > { %285 = vrot.lane.b32.xlu1 %v270_v61, %s490_s29  ;;  %271 = vrot.lane.b32.xlu0 %v270_v61, %s489_s28  ;;  %s430_s28 = sshll.u32 %s491_s27, 4  ;;  %s431_s28 = int_to_ptr.vmem [resolvable:$false] %s430_s28 }
  0xb4   : > { %s432_s13 = scalar_lea.vmem %s431_s28, 256  ;;  %p433_p0 = scmp.lt.s32.totalorder %s310_s21, %s431_s28 }
  0xb5   : > { %p434_p1 = scmp.lt.s32.totalorder %s432_s13, %s426_s26 }
  0xb7   : > { %p435_p2 = por %p434_p1, %p433_p0 }
  0xb9   : > { %p436_p3 = pnand %p435_p2, %p429_p13 }
 0x11d   : > { %v240_v2 = vpop.permute.xlu1 %239  ;;  %v227_v4 = vpop.permute.xlu0 %226 }
 0x11e   : > { %v232_v5 = vmul.f32 %v231_v0, %v227_v4  ;;  %v245_v7 = vmul.f32 %v244_v1, %v240_v2 }
 0x120   : > { %v238_v8 = vadd.f32 %v237_v62, %v232_v5 }
 0x121   : > { %v248_v9 = vpop.permute.xlu0 %247  ;;  %v262_v13 = vpop.permute.xlu1 %261 }
 0x122   : > { %v246_v11 = vadd.f32 %v245_v7, %v238_v8  ;;  %v253_v12 = vmul.f32 %v252_v6, %v248_v9  ;;  %v267_v17 = vmul.f32 %v266_v10, %v262_v13 }
 0x124   : > { %v254_v14 = vadd.f32 %v253_v12, %v246_v11 }
 0x125   : > { %v272_v16 = vpop.permute.xlu0 %271  ;;  %v286_v22 = vpop.permute.xlu1 %285 }
 0x126   : > { %v260_v18 = vadd.f32 %v259_v58, %v254_v14  ;;  %v277_v20 = vmul.f32 %v276_v15, %v272_v16  ;;  %v291_v24 = vmul.f32 %v379_v21, %v286_v22 }
 0x128   : > { %v268_v19 = vadd.f32 %v267_v17, %v260_v18 }
 0x12a   : > { %v278_v23 = vadd.f32 %v277_v20, %v268_v19 }
 0x12c   : > { %v284_v25 = vadd.f32 %v283_v63, %v278_v23 }
 0x12e   : > { %v292_v26 = vadd.f32 %v291_v24, %v284_v25 }
 0x130   : > { %v293_v27 = vadd.f32 %v292_v26, %v564_v3 }
 0x132   : > { %294 = vst [vmem:[%s134_s17] sm:$0xff] %v293_v27 }
 0x133   : > { %439 = shalt.err (!%p436_p3)
}
 0x134   : > { %s440_s29 = scalar_lea.hbm %s307_s24, 128  ;;  %s444_s4 = scalar_lea.hbm %s636_s2, 256 }
 0x135   : > { %p441_p4 = scmp.ne.s32.totalorder %s307_s24, %s440_s29  ;;  %p445_p9 = scmp.lt.s32.totalorder %s307_s24, %s636_s2 }
 0x136   : > { %p446_p10 = scmp.lt.s32.totalorder %s444_s4, %s440_s29 }
 0x137   : > { %p442_p7 = pnand %p441_p4, %p545_p5 }
 0x138   : > { %p447_p11 = por %p446_p10, %p445_p9 }
 0x139   : > { %p443_p8 = pneg %p442_p7 }
 0x13b   : > { %p448_p12 = pnand %p447_p11, %p443_p8 }
 0x13d   : > { %451 = shalt.err (!%p448_p12)
}
 0x13e   : > { %384 = dma.vmem_to_hbm [thread:$0]  (%p545_p5), %s310_s21, 128, %s307_s24, %s296_s25  }
 0x13f PF: > { %p390_p13 = scmp.ge.s32.totalorder %s486_s12, 2  ;;  %s321_s7 = sand.u32 1, %s474_s9  }
 0x140   : > { %s322_s8 = scalar_lea.sflag [#allocation3], %s321_s7 }
 0x141   : > { %p387_p0 = pnand %p390_p13, %p549_p6 }
 0x143   : > { %p388_p1 = pneg %p387_p0 }
 0x145   : > { %469 = dma.done.wait (%p388_p1), %s322_s8, 128  }
 0x146   : > { %471 = vsyncadd (%p388_p1), %s322_s8, 4294967168  ;;  %p12_p2 = scmp.ge.s32.totalorder %s532_s15, 4   ;;  %s639_s9 = smov %s478_s10 }
 0x147   : > { %s640_s10 = smov %s482_s11  ;;  %s641_s11 = smov %s543_s18 }
 0x148   : > { %s642_s12 = smov %s532_s15  ;;  %14 = sbr.rel (!%p12_p2) target bundleno = 3 (0x3), region = 64 }
 0x14d   :  { %327 = vsyncpa [#allocation3], 1 }
 0x14e   :  { %329 = vsyncpa [#allocation3 + $0x1], 1 }

</bundles_post_ra>
